<compile_context>
chip_gen: v7x
topology: tpu7x:2x2x1
jax: 0.10.0
libtpu: 0.0.40
codegen_flags: <defaults>
</compile_context>

<pallas_src>
import numpy as np
import jax
import jax.numpy as jnp
from jax.experimental import pallas as pl
from jax.experimental.pallas import tpu as pltpu


def _interaction_kernel(q_ref, k_ref, e_ref, we_ref, be_ref, wo_ref, bo_ref,
                        out_ref):
    # q_ref : (1, Ti, H)    bf16  pre-scaled q rows of this query tile
    # k_ref : (1, N, H)     bf16  all key rows
    # e_ref : (1, Ti, N, H) bf16  edge tile
    # we/wo : (H, H)        bf16  linear_e / e_output_layer weights
    # be/bo : (1, H)        f32   biases (added after f32 accumulation)
    # out   : (1, Ti, N, H) f32   full lane-dense block; [1:,1:] + permute in XLA
    ti = e_ref.shape[1]
    n = e_ref.shape[2]
    h = e_ref.shape[3]

    # Edge projection: one long (Ti*N, H) @ (H, H) bf16 MXU matmul, f32 accum.
    e_flat = e_ref[0].reshape(ti * n, h)
    ep = jnp.dot(e_flat, we_ref[...], preferred_element_type=jnp.float32) + be_ref[...]

    # Triple product q_i * k_j * e'_ij (per-channel, h-major head split), f32.
    q = q_ref[0].astype(jnp.float32)                              # (Ti, H)
    k = k_ref[0].astype(jnp.float32)                              # (N, H)
    qk = (q[:, None, :] * k[None, :, :]).reshape(ti * n, h)       # (Ti*N, H)
    qk_e = (qk * ep).astype(jnp.bfloat16)

    # Output projection (e_output_layer) on full H lanes, then inf -> 0 mask.
    w = jnp.dot(qk_e, wo_ref[...], preferred_element_type=jnp.float32) + bo_ref[...]
    w = jnp.where(jnp.isinf(w), jnp.zeros_like(w), w)
    out_ref[0] = w.reshape(ti, n, h)


def _vmem_capacity_bytes():
    """Per-TensorCore VMEM bytes; conservative fallback = v7x (64 MiB)."""
    try:
        info = pltpu.get_tpu_info()
        cap = getattr(info, "vmem_capacity_bytes", None)
        if cap:
            return int(cap)
    except Exception:
        pass
    return 64 << 20


def _step_vmem_bytes(ti, n, h):
    """Per-grid-step VMEM footprint: double-buffered blocks + live temporaries."""
    e_blk = 2 * ti * n * h                     # bf16 e tile
    out_blk = 4 * ti * n * h                   # f32 out tile
    qk_blk = 2 * (ti * h + n * h)              # bf16 q tile + full k
    wt_blk = 2 * (2 * h * h) + 2 * (4 * h)     # bf16 weights + f32 biases
    temps = 12 * ti * n * h                    # ep/qk (f32), qk_e (bf16), reshape copies
    return 2 * (e_blk + out_blk + qk_blk + wt_blk) + temps


def _choose_i_tile(n, h, batch, budget_bytes):
    """Largest divisor of n (multiple of 8, or n itself, so BlockSpecs stay
    legal) whose per-step footprint fits the budget; keeps >= 2 grid steps when
    batch == 1 so both v7x TensorCores get work."""
    divs = [d for d in range(n, 0, -1) if n % d == 0]
    valid = [d for d in divs if d % 8 == 0 or d == n]
    fitting = [d for d in valid if _step_vmem_bytes(d, n, h) <= budget_bytes]
    cands = fitting or [valid[-1]]
    ti = cands[0]
    if batch == 1 and n // ti < 2:
        smaller = [d for d in cands if d < n]
        if smaller:
            ti = smaller[0]
    return ti


def interaction_layer_forward(x, e, params, *, num_heads, eps=1e-5):
    B, N, H = x.shape
    att = H // num_heads
    scale = float(att) ** -0.5

    # --- XLA prologue: LayerNorm + q/k projections (O(N*H^2) << O(N^2*H^2)).
    mean = jnp.mean(x, axis=-1, keepdims=True)
    var = jnp.mean((x - mean) ** 2, axis=-1, keepdims=True)
    y = (x - mean) * jax.lax.rsqrt(var + eps) * params["gamma"][0] + params["beta"][0]
    q = ((y @ params["wq"] + params["bq"][0]) * scale).astype(jnp.bfloat16)
    k = (y @ params["wk"] + params["bk"][0]).astype(jnp.bfloat16)

    # bf16 for the HBM-dominant operands; f32 accumulation happens in-kernel.
    # TODO(synk): in a real model e would already arrive in bf16; the cast here
    #   costs one extra XLA pass over e.
    e_bf16 = e.astype(jnp.bfloat16)
    we = params["we"].astype(jnp.bfloat16)
    wo = params["wo"].astype(jnp.bfloat16)
    be = params["be"].astype(jnp.float32)
    bo = params["bo"].astype(jnp.float32)

    # --- generation-aware tile / VMEM sizing.
    cap = _vmem_capacity_bytes()                       # 64 MiB v7x / 128 MiB v5e,v6e
    vmem_limit = max(32 << 20, min(int(cap * 0.78), cap - (8 << 20)))
    budget = int(0.7 * vmem_limit)
    ti = _choose_i_tile(N, H, B, budget)
    grid = (B, N // ti)
    n_steps = B * (N // ti)

    flops = int(4 * B * N * N * H * H              # edge + output projections
                + 3 * B * N * N * H)               # triple product
    bytes_accessed = int(2 * B * N * N * H         # e (bf16)
                         + 4 * B * N * N * H       # out (f32)
                         + n_steps * (2 * (ti + N) * H + 4 * H * H + 8 * H))

    def const2d(shape):
        return pl.BlockSpec(shape, lambda b, i: (0, 0))

    qk_full = pl.pallas_call(
        _interaction_kernel,
        out_shape=jax.ShapeDtypeStruct((B, N, N, H), jnp.float32),
        grid=grid,
        in_specs=[
            pl.BlockSpec((1, ti, H), lambda b, i: (b, i, 0)),        # q tile
            pl.BlockSpec((1, N, H), lambda b, i: (b, 0, 0)),         # k (all rows)
            pl.BlockSpec((1, ti, N, H), lambda b, i: (b, i, 0, 0)),  # e tile
            const2d((H, H)),   # We  (linear_e)
            const2d((1, H)),   # be
            const2d((H, H)),   # Wo  (e_output_layer)
            const2d((1, H)),   # bo
        ],
        out_specs=pl.BlockSpec((1, ti, N, H), lambda b, i: (b, i, 0, 0)),
        compiler_params=pltpu.CompilerParams(
            dimension_semantics=("parallel", "parallel"),
            vmem_limit_bytes=vmem_limit),
        cost_estimate=pl.CostEstimate(flops=flops, transcendentals=0,
                                      bytes_accessed=bytes_accessed),
    )(q, k, e_bf16, we, be, wo, bo)

    # XLA epilogue: drop key j==0 / channel c==0 and permute (b,i,j,c)->(b,j,c,i)
    # in one fused slice+transpose. The isinf mask is already applied in-kernel.
    return jnp.transpose(qk_full[:, :, 1:, 1:], (0, 2, 3, 1))


def reference_forward(x, e, params, *, num_heads, eps=1e-5):
    """Pure-JAX f32 mirror of the PyTorch forward (head-split form)."""
    B, N, H = x.shape
    att = H // num_heads
    scale = float(att) ** -0.5

    mean = jnp.mean(x, axis=-1, keepdims=True)
    var = jnp.mean((x - mean) ** 2, axis=-1, keepdims=True)
    y = (x - mean) / jnp.sqrt(var + eps) * params["gamma"][0] + params["beta"][0]

    q = y @ params["wq"] + params["bq"][0]
    k = y @ params["wk"] + params["bk"][0]
    ep = e @ params["we"] + params["be"][0]

    qh = (q * scale).reshape(B, N, num_heads, att).transpose(0, 2, 1, 3)   # b h i d
    kh = k.reshape(B, N, num_heads, att).transpose(0, 2, 1, 3)             # b h j d
    eh = ep.reshape(B, N, N, num_heads, att).transpose(0, 3, 1, 2, 4)      # b h i j d
    qk_e = qh[:, :, :, None, :] * kh[:, :, None, :, :] * eh                # b h i j d
    qk_flat = qk_e.transpose(0, 2, 3, 1, 4).reshape(B, N, N, H)            # b i j (h d)
    w = qk_flat @ params["wo"] + params["bo"][0]

    new_qk = w[:, :, 1:, 1:]
    new_qk = jnp.where(jnp.isinf(new_qk), jnp.zeros_like(new_qk), new_qk)
    return jnp.transpose(new_qk, (0, 2, 3, 1))


def make_params(key, H):
    def xavier(k, shape):
        bound = float(np.sqrt(6.0 / (shape[0] + shape[1])))
        return jax.random.uniform(k, shape, jnp.float32, -bound, bound)

    ks = jax.random.split(key, 4)
    return {
        "gamma": jnp.ones((1, H), jnp.float32),
        "beta": jnp.zeros((1, H), jnp.float32),
        "wq": xavier(ks[0], (H, H)), "bq": jnp.zeros((1, H), jnp.float32),
        "wk": xavier(ks[1], (H, H)), "bk": jnp.zeros((1, H), jnp.float32),
        "we": xavier(ks[2], (H, H)), "be": jnp.zeros((1, H), jnp.float32),
        # e_output_layer: zero-init in PyTorch; xavier here (see NOTE above).
        "wo": xavier(ks[3], (H, H)), "bo": jnp.zeros((1, H), jnp.float32),
    }


if __name__ == "__main__":
    B, N, H, num_heads = 2, 8, 32, 4

    key = jax.random.PRNGKey(0)
    kx, ke, kp = jax.random.split(key, 3)
    x = jax.random.normal(kx, (B, N, H), jnp.float32)
    attn_bias = jax.random.normal(ke, (B, N, N, H), jnp.float32)  # edge features "e"
    params = make_params(kp, H)

    out = interaction_layer_forward(x, attn_bias, params, num_heads=num_heads)
    out = jax.block_until_ready(out)

    ref = reference_forward(x, attn_bias, params, num_heads=num_heads)
    assert out.shape == (B, N - 1, H - 1, N), out.shape
    # Tolerance accounts for bf16 quantization of e/q/k/weights in the kernel.
    np.testing.assert_allclose(np.asarray(out), np.asarray(ref), rtol=3e-2, atol=3e-2)

    print("KERNEL_OK")
</pallas_src>

<mosaic_0001>
module attributes {stable_mosaic.version = 11 : i64} {
  func.func @_interaction_kernel(%arg0: i32, %arg1: i32, %arg2: memref<1x8x32xbf16, #tpu.memory_space<vmem>>, %arg3: memref<1x8x32xbf16, #tpu.memory_space<vmem>>, %arg4: memref<1x8x8x32xbf16, #tpu.memory_space<vmem>>, %arg5: memref<32x32xbf16, #tpu.memory_space<vmem>>, %arg6: memref<1x32xf32, #tpu.memory_space<vmem>>, %arg7: memref<32x32xbf16, #tpu.memory_space<vmem>>, %arg8: memref<1x32xf32, #tpu.memory_space<vmem>>, %arg9: memref<1x8x8x32xf32, #tpu.memory_space<vmem>>) attributes {dimension_semantics = [#tpu.dimension_semantics<parallel>, #tpu.dimension_semantics<parallel>], iteration_bounds = array<i64: 2, 1>, scalar_prefetch = 0 : i64, scratch_operands = 0 : i64, tpu.core_type = #tpu.core_type<tc>, window_params = [{transform_indices = @transform_0, window_bounds = array<i64: 1, 8, 32>}, {transform_indices = @transform_1, window_bounds = array<i64: 1, 8, 32>}, {transform_indices = @transform_2, window_bounds = array<i64: 1, 8, 8, 32>}, {pipeline_mode = #tpu.pipeline_mode<synchronous>, transform_indices = @transform_3, window_bounds = array<i64: 32, 32>}, {pipeline_mode = #tpu.pipeline_mode<synchronous>, transform_indices = @transform_4, window_bounds = array<i64: 1, 32>}, {pipeline_mode = #tpu.pipeline_mode<synchronous>, transform_indices = @transform_5, window_bounds = array<i64: 32, 32>}, {pipeline_mode = #tpu.pipeline_mode<synchronous>, transform_indices = @transform_6, window_bounds = array<i64: 1, 32>}, {transform_indices = @transform_7, window_bounds = array<i64: 1, 8, 8, 32>}]} {
    %c0 = arith.constant 0 : index
    %c0_0 = arith.constant 0 : index
    %c0_1 = arith.constant 0 : index
    %c0_2 = arith.constant 0 : index
    %0 = vector.load %arg4[%c0, %c0_0, %c0_1, %c0_2] : memref<1x8x8x32xbf16, #tpu.memory_space<vmem>>, vector<1x8x8x32xbf16>
    %1 = vector.shape_cast %0 : vector<1x8x8x32xbf16> to vector<8x8x32xbf16>
    %2 = vector.shape_cast %1 : vector<8x8x32xbf16> to vector<64x32xbf16>
    %c0_3 = arith.constant 0 : index
    %c0_4 = arith.constant 0 : index
    %3 = vector.load %arg5[%c0_3, %c0_4] : memref<32x32xbf16, #tpu.memory_space<vmem>>, vector<32x32xbf16>
    %cst = arith.constant dense<0.000000e+00> : vector<64x32xf32>
    %4 = tpu.matmul %2, %3, %cst {dimension_numbers = #tpu.dot_dimension_numbers<[1], [0], [0], [1], [0, 0, 1, 1], [], []>} : vector<64x32xbf16>, vector<32x32xbf16>, vector<64x32xf32> -> vector<64x32xf32>
    %c0_5 = arith.constant 0 : index
    %c0_6 = arith.constant 0 : index
    %5 = vector.load %arg6[%c0_5, %c0_6] : memref<1x32xf32, #tpu.memory_space<vmem>>, vector<1x32xf32>
    %6 = vector.broadcast %5 : vector<1x32xf32> to vector<64x32xf32>
    %7 = arith.addf %4, %6 : vector<64x32xf32>
    %c0_7 = arith.constant 0 : index
    %c0_8 = arith.constant 0 : index
    %c0_9 = arith.constant 0 : index
    %8 = vector.load %arg2[%c0_7, %c0_8, %c0_9] : memref<1x8x32xbf16, #tpu.memory_space<vmem>>, vector<1x8x32xbf16>
    %9 = vector.shape_cast %8 : vector<1x8x32xbf16> to vector<8x32xbf16>
    %10 = arith.extf %9 : vector<8x32xbf16> to vector<8x32xf32>
    %c0_10 = arith.constant 0 : index
    %c0_11 = arith.constant 0 : index
    %c0_12 = arith.constant 0 : index
    %11 = vector.load %arg3[%c0_10, %c0_11, %c0_12] : memref<1x8x32xbf16, #tpu.memory_space<vmem>>, vector<1x8x32xbf16>
    %12 = vector.shape_cast %11 : vector<1x8x32xbf16> to vector<8x32xbf16>
    %13 = arith.extf %12 : vector<8x32xbf16> to vector<8x32xf32>
    %14 = vector.shape_cast %10 : vector<8x32xf32> to vector<8x1x32xf32>
    %15 = vector.shape_cast %13 : vector<8x32xf32> to vector<1x8x32xf32>
    %16 = vector.broadcast %14 : vector<8x1x32xf32> to vector<8x8x32xf32>
    %17 = vector.broadcast %15 : vector<1x8x32xf32> to vector<8x8x32xf32>
    %18 = arith.mulf %16, %17 : vector<8x8x32xf32>
    %19 = vector.shape_cast %18 : vector<8x8x32xf32> to vector<64x32xf32>
    %20 = arith.mulf %19, %7 : vector<64x32xf32>
    %21 = arith.truncf %20 : vector<64x32xf32> to vector<64x32xbf16>
    %c0_13 = arith.constant 0 : index
    %c0_14 = arith.constant 0 : index
    %22 = vector.load %arg7[%c0_13, %c0_14] : memref<32x32xbf16, #tpu.memory_space<vmem>>, vector<32x32xbf16>
    %cst_15 = arith.constant dense<0.000000e+00> : vector<64x32xf32>
    %23 = tpu.matmul %21, %22, %cst_15 {dimension_numbers = #tpu.dot_dimension_numbers<[1], [0], [0], [1], [0, 0, 1, 1], [], []>} : vector<64x32xbf16>, vector<32x32xbf16>, vector<64x32xf32> -> vector<64x32xf32>
    %c0_16 = arith.constant 0 : index
    %c0_17 = arith.constant 0 : index
    %24 = vector.load %arg8[%c0_16, %c0_17] : memref<1x32xf32, #tpu.memory_space<vmem>>, vector<1x32xf32>
    %25 = vector.broadcast %24 : vector<1x32xf32> to vector<64x32xf32>
    %26 = arith.addf %23, %25 : vector<64x32xf32>
    %27 = math.absf %26 : vector<64x32xf32>
    %cst_18 = arith.constant 0x7F800000 : f32
    %28 = vector.broadcast %cst_18 : f32 to vector<64x32xf32>
    %29 = arith.cmpf oeq, %27, %28 : vector<64x32xf32>
    %cst_19 = arith.constant 0.000000e+00 : f32
    %30 = vector.broadcast %cst_19 : f32 to vector<64x32xf32>
    %31 = arith.select %29, %30, %26 : vector<64x32xi1>, vector<64x32xf32>
    %32 = vector.shape_cast %31 : vector<64x32xf32> to vector<8x8x32xf32>
    %c0_20 = arith.constant 0 : index
    %c0_21 = arith.constant 0 : index
    %c0_22 = arith.constant 0 : index
    %c0_23 = arith.constant 0 : index
    %33 = vector.load %arg9[%c0_20, %c0_21, %c0_22, %c0_23] : memref<1x8x8x32xf32, #tpu.memory_space<vmem>>, vector<1x8x8x32xf32>
    %34 = vector.shape_cast %33 : vector<1x8x8x32xf32> to vector<8x8x32xf32>
    %35 = vector.shape_cast %32 : vector<8x8x32xf32> to vector<1x8x8x32xf32>
    tpu.vector_store %arg9[%c0_20, %c0_21, %c0_22, %c0_23], %35 {strides = array<i32>} : memref<1x8x8x32xf32, #tpu.memory_space<vmem>>, vector<1x8x8x32xf32>,
    return
  }
  func.func @transform_0(%arg0: i32, %arg1: i32) -> (i32, i32, i32) {
    %c0_i32 = arith.constant 0 : i32
    %c0_i32_0 = arith.constant 0 : i32
    return %arg0, %arg1, %c0_i32 : i32, i32, i32
  }
  func.func @transform_1(%arg0: i32, %arg1: i32) -> (i32, i32, i32) {
    %c0_i32 = arith.constant 0 : i32
    %c0_i32_0 = arith.constant 0 : i32
    %c0_i32_1 = arith.constant 0 : i32
    return %arg0, %c0_i32, %c0_i32_0 : i32, i32, i32
  }
  func.func @transform_2(%arg0: i32, %arg1: i32) -> (i32, i32, i32, i32) {
    %c0_i32 = arith.constant 0 : i32
    %c0_i32_0 = arith.constant 0 : i32
    %c0_i32_1 = arith.constant 0 : i32
    return %arg0, %arg1, %c0_i32, %c0_i32_0 : i32, i32, i32, i32
  }
  func.func @transform_3(%arg0: i32, %arg1: i32) -> (i32, i32) {
    %c0_i32 = arith.constant 0 : i32
    %c0_i32_0 = arith.constant 0 : i32
    %c0_i32_1 = arith.constant 0 : i32
    return %c0_i32, %c0_i32_0 : i32, i32
  }
  func.func @transform_4(%arg0: i32, %arg1: i32) -> (i32, i32) {
    %c0_i32 = arith.constant 0 : i32
    %c0_i32_0 = arith.constant 0 : i32
    %c0_i32_1 = arith.constant 0 : i32
    return %c0_i32, %c0_i32_0 : i32, i32
  }
  func.func @transform_5(%arg0: i32, %arg1: i32) -> (i32, i32) {
    %c0_i32 = arith.constant 0 : i32
    %c0_i32_0 = arith.constant 0 : i32
    %c0_i32_1 = arith.constant 0 : i32
    return %c0_i32, %c0_i32_0 : i32, i32
  }
  func.func @transform_6(%arg0: i32, %arg1: i32) -> (i32, i32) {
    %c0_i32 = arith.constant 0 : i32
    %c0_i32_0 = arith.constant 0 : i32
    %c0_i32_1 = arith.constant 0 : i32
    return %c0_i32, %c0_i32_0 : i32, i32
  }
  func.func @transform_7(%arg0: i32, %arg1: i32) -> (i32, i32, i32, i32) {
    %c0_i32 = arith.constant 0 : i32
    %c0_i32_0 = arith.constant 0 : i32
    %c0_i32_1 = arith.constant 0 : i32
    return %arg0, %arg1, %c0_i32, %c0_i32_0 : i32, i32, i32, i32
  }
}

</mosaic_0001>

<bundles_post_ra>
// kernel: tpu_custom_call.1
= control target key start
LH: loop header
LB: loop body
LE: loop exit
PB: predicated region body
PF: predicated region fallthrough
CT: control target
= control target key end

     0   :  { %s1730_s0 = inlined_call_operand.hbm [shape: bf16[2,8,32], index: 0, kind: input, shape index: {}]   ;;  %s1731_s1 = inlined_call_operand.hbm [shape: bf16[2,8,32], index: 1, kind: input, shape index: {}]   ;;  %s1732_s2 = inlined_call_operand.hbm [shape: bf16[2,8,8,32], index: 2, kind: input, shape index: {}]   ;;  %s1733_s3 = inlined_call_operand.hbm [shape: bf16[32,32], index: 3, kind: input, shape index: {}]   ;;  %s1734_s4 = inlined_call_operand.vmem [shape: f32[1,32], index: 4, kind: input, shape index: {}]   ;;  %s1735_s5 = inlined_call_operand.vmem [shape: bf16[32,32], index: 5, kind: input, shape index: {}]   ;;  %s1736_s6 = inlined_call_operand.vmem [shape: f32[1,32], index: 6, kind: input, shape index: {}]   ;;  %s1737_s7 = inlined_call_operand.hbm [shape: f32[2,8,8,32], index: 7, kind: output, shape index: {}]  }
   0x1   :  { %1757 = sst [smem:[#allocation23_spill]] %s1731_s1 }
   0x2   :  { %1758 = sst [smem:[#allocation24_spill]] %s1737_s7 }
   0x3   :  { %12 = vsyncpa [#allocation3], 0 }
   0x4   :  { %14 = vsyncpa [#allocation3 + $0x1], 0 }
   0x5   :  { %15 = vsyncpa [#allocation6], 0 }
   0x6   :  { %17 = vsyncpa [#allocation6 + $0x1], 0 }
   0x7   :  { %18 = vsyncpa [#allocation9], 0 }
   0x8   :  { %19 = vsyncpa [#allocation4], 0 }
   0x9   :  { %21 = vsyncpa [#allocation4 + $0x1], 0  ;;  %s1374_s24 = smov 0   ;;  %s1376_s25 = smov 0  }
   0xa   :  { %s1378_s26 = smov 0   ;;  %s1380_s27 = smov 0  }
   0xb   :  { %s1382_s28 = smov 0   ;;  %s1384_s29 = smov 0  }
   0xc LB: > { %1759 = sst [smem:[#allocation15_spill]] %s1302_s24  ;;  %s39_s30 = sadd.s32 1, %s1318_s28  ;;  %s1322_s29 = sphi %s1384_s29, %s27_s29   ;;  %s1318_s28 = sphi %s1382_s28, %s1799_s28   ;;  %s1314_s27 = sphi %s1380_s27, %s1798_s27   ;;  %s1310_s26 = sphi %s1378_s26, %s1794_s26   ;;  %s1306_s25 = sphi %s1376_s25, %s1797_s25   ;;  %s1302_s24 = sphi %s1374_s24, %s1796_s24  }
   0xd   : > { %1760 = sst [smem:[#allocation16_spill]] %s1310_s26  ;;  %s48_s8 = sadd.s32 1, %s1310_s26 }
   0xe   : > { %1761 = sst [smem:[#allocation17_spill]] %s1314_s27  ;;  %p41_p0 = scmp.ge.s32.totalorder %s39_s30, 2 }
   0xf   : > { %1762 = sst [smem:[#allocation18_spill]] %s1322_s29  ;;  %p1739_p1 = scmp.ne.s32.totalorder %s1310_s26, %s1306_s25 }
  0x10   : > { %p56_p2 = scmp.eq.s32.totalorder %s1322_s29, 0  ;;  %s1801_s30 = smov (%p41_p0, %s39_s30), 0 }
  0x11   : > { %1763 = sst [smem:[#allocation19_spill]] %s1801_s30  ;;  %p1049_p5 = scmp.lt.s32.totalorder %s1322_s29, 2 }
  0x12   : > { %p57_p4 = por %p56_p2, %p1739_p1  ;;  %s43_s9 = ssub.s32 %s1318_s28, %s1801_s30 }
  0x13   : > { %s1419_s10 = sand.u32 1, %s1310_s26   ;;  %p46_p6 = scmp.eq.s32.totalorder %s43_s9, 0 }
  0x14   : > { %s1738_s11 = sshll.u32 %s1419_s10, 2  ;;  %s945_s12 = sshll.u32 %s1318_s28, 6 }
  0x15   : > { %p1423_p7 = pnand %p1049_p5, %p57_p4  ;;  %s292_s15 = sand.u32 1, %s1322_s29  }
  0x16   : > { %s1428_s14 = scalar_select %p46_p6, %s1310_s26, %s48_s8  }
  0x17   : > { %s1764_s13 = scalar_select %p1423_p7, 1, 0 }
  0x18   : > { %1765 = sst [smem:[#allocation20_spill]] %s1428_s14  ;;  %s1766_s1 = sld [smem:[#allocation23_spill]] }
  0x19   : > { %s296_s19 = scalar_lea.vmem [#allocation5], %s1738_s11  ;;  %s948_s21 = sshll.u32 %s1419_s10, 5 }
  0x1a   : > { %s303_s20 = sshll.u32 %s296_s19, 4  ;;  %s1443_s22 = scalar_lea.sflag [#allocation6], %s292_s15  ;;  %s1440_s20 = int_to_ptr.vmem [resolvable:$true] %s303_s20 }
  0x1b   : > { %p1449_p9 = pneg %p1423_p7 }
  0x1d   : > { %s1767_s8 = scalar_select %p1449_p9, 1, 0 }
  0x1e   : > { %s1436_s18 = scalar_lea.hbm %s1766_s1, %s945_s12  ;;  %s1119_s17 = scalar_lea.hbm %s1766_s1, 128 }
  0x1f   : > { %s1114_s23 = scalar_lea.hbm %s1436_s18, 64  ;;  %p1120_p12 = scmp.lt.u32.totalorder %s1436_s18, %s1766_s1 }
  0x20   : > { %p1115_p8 = scmp.ne.s32.totalorder %s1436_s18, %s1114_s23  ;;  %p1121_p13 = scmp.lt.u32.totalorder %s1119_s17, %s1114_s23 }
  0x21   : > { %p1123_p2 = scmp.lt.u32.totalorder %s1114_s23, %s1436_s18 }
  0x22   : > { %p1117_p10 = pnand %p1449_p9, %p1115_p8  ;;  %p1122_p0 = por %p1121_p13, %p1120_p12 }
  0x24   : > { %p1118_p11 = pneg %p1117_p10  ;;  %p1124_p4 = por %p1123_p2, %p1122_p0 }
  0x26   : > { %p1125_p5 = pnand %p1124_p4, %p1118_p11 }
  0x28   : > { %1128 = shalt.err (!%p1125_p5)
}
  0x29   : > { %s1129_s15 = scalar_lea.vmem %s1440_s20, 64  ;;  %s1324_s9 = smov [#allocation5]  }
  0x2a   : > { %p1130_p6 = scmp.ne.s32.totalorder %s1440_s20, %s1129_s15  ;;  %s1134_s16 = sshll.u32 %s1324_s9, 4  ;;  %s1135_s16 = int_to_ptr.vmem [resolvable:$false] %s1134_s16 }
  0x2b   : > { %s1136_s11 = scalar_lea.vmem %s1135_s16, 128  ;;  %p1137_p3 = scmp.lt.s32.totalorder %s1440_s20, %s1135_s16 }
  0x2c   : > { %p1132_p8 = pnand %p1130_p6, %p1449_p9  ;;  %p1138_p1 = scmp.lt.s32.totalorder %s1136_s11, %s1129_s15 }
  0x2e   : > { %p1133_p10 = pneg %p1132_p8  ;;  %p1139_p12 = por %p1138_p1, %p1137_p3 }
  0x30   : > { %p1140_p13 = pnand %p1139_p12, %p1133_p10 }
  0x32   : > { %1143 = shalt.err (!%p1140_p13)
}
  0x33   : > { %1040 = dma.hbm_to_vmem [thread:$0]  (!%p1423_p7), %s1436_s18, 64, %s1440_s20, %s1443_s22  }
  0x34   : > { %s314_s23 = scalar_lea.vmem [#allocation7], %s948_s21  ;;  %s1478_s19 = sadd.s32 4294967295, %s1322_s29  }
  0x35   : > { %s323_s17 = sshll.u32 %s314_s23, 4  ;;  %s940_s15 = sadd.s32 4294967294, %s1322_s29   ;;  %s1475_s17 = int_to_ptr.vmem [resolvable:$true] %s323_s17 }
  0x36   : > { %p61_p1 = scmp.ne.s32.totalorder %s1306_s25, %s1302_s24  ;;  %p1749_p3 = scmp.eq.s32.totalorder %s1478_s19, 0 }
  0x37   : > { %p225_p11 = scmp.eq.s32.totalorder %s1478_s19, 1  ;;  %p231_p0 = scmp.eq.s32.totalorder %s940_s15, 1 }
  0x38   : > { %p941_p2 = scmp.ge.s32.totalorder %s1322_s29, 1  ;;  %p1488_p4 = por %p1749_p3, %p61_p1 }
  0x39   : > { %p1769_p5 = scmp.ne.s32.totalorder %s1310_s26, %s1306_s25  ;;  %p1499_p8 = por %p231_p0, %p61_p1 }
  0x3a   : > { %s1768_s18 = scalar_select %p1488_p4, 1, 0 }
  0x3b   : > { %p1495_p6 = por %p225_p11, %p1769_p5  ;;  %p238_p10 = scmp.lt.s32.totalorder %s1322_s29, 3 }
  0x3c   : > { %s1772_s21 = scalar_select %p1499_p8, 1, 0 }
  0x3d   : > { %s1770_s20 = scalar_select %p1495_p6, 1, 0 }
  0x3e   : > { %1773 = sst [smem:[#allocation22_spill]] %s1772_s21  ;;  %p1504_p12 = pnand %p941_p2, %p238_p10 }
  0x3f   : > { %1771 = sst [smem:[#allocation21_spill]] %s1770_s20  ;;  %s1325_s16 = smov [#allocation8]  }
  0x40   : > { %s1774_s9 = scalar_select %p1504_p12, 1, 0 }
  0x41   : > { %s250_s11 = sshll.u32 %s1325_s16, 4  ;;  %p1030_p13 = pneg %p1504_p12  ;;  %s1508_s11 = int_to_ptr.vmem [resolvable:$true] %s250_s11 }
  0x42   : > { %s1523_s30 = scalar_lea.hbm %s1730_s0, %s945_s12  ;;  %s1776_s14 = sshll.u32 %s1419_s10, 2 }
  0x43   : > { %p1514_p11 = pnand %p1030_p13, %p1749_p3  ;;  %s277_s26 = scalar_lea.vmem [#allocation2], %s1776_s14 }
  0x44   : > { %s285_s29 = sshll.u32 %s277_s26, 4  ;;  %s1144_s7 = scalar_lea.hbm %s1733_s3, 256  ;;  %s1528_s29 = int_to_ptr.vmem [resolvable:$true] %s285_s29 }
  0x45   : > { %p1145_p1 = scmp.ne.s32.totalorder %s1733_s3, %s1144_s7  ;;  %p1146_p0 = pneg %p1514_p11 }
  0x46   : > { %p1151_p10 = scmp.lt.u32.totalorder %s1144_s7, %s1733_s3 }
  0x47   : > { %p1147_p2 = pnand %p1146_p0, %p1145_p1 }
  0x49   : > { %p1148_p5 = pneg %p1147_p2 }
  0x4b   : > { %p1153_p13 = pnand %p1151_p10, %p1148_p5 }
  0x4d   : > { %1156 = shalt.err (!%p1153_p13)
}
  0x4e   : > { %s1157_s26 = scalar_lea.vmem %s1508_s11, 256  ;;  %p1165_p4 = scmp.lt.s32.totalorder %s1508_s11, %s1508_s11 }
  0x4f   : > { %p1158_p3 = scmp.ne.s32.totalorder %s1508_s11, %s1157_s26  ;;  %p1166_p12 = scmp.lt.s32.totalorder %s1157_s26, %s1157_s26 }
  0x51   : > { %p1160_p8 = pnand %p1158_p3, %p1146_p0  ;;  %p1167_p7 = por %p1166_p12, %p1165_p4 }
  0x53   : > { %p1161_p6 = pneg %p1160_p8 }
  0x55   : > { %p1168_p9 = pnand %p1167_p7, %p1161_p6 }
  0x57   : > { %1171 = shalt.err (!%p1168_p9)
}
  0x58   : > { %s1326_s24 = smov 64   ;;  %s1327_s7 = smov 4  }
  0x59   : > { %1033 = dma.hbm_to_vmem [thread:$0]  (!%p1514_p11), %s1733_s3, 256, %s1508_s11, [#allocation9], %s1326_s24, %s1326_s24, %s1327_s7  }
  0x5a   : > { %s274_s20 = scalar_lea.sflag [#allocation3], %s1419_s10  ;;  %s1172_s21 = scalar_lea.hbm %s1523_s30, 64 }
  0x5b   : > { %p1173_p7 = scmp.ne.s32.totalorder %s1523_s30, %s1172_s21  ;;  %p1777_p9 = scmp.ne.s32.totalorder %s1767_s8, 0 }
  0x5c   : > { %s1177_s12 = scalar_lea.hbm %s1730_s0, 128  ;;  %p1178_p6 = scmp.lt.u32.totalorder %s1523_s30, %s1730_s0 }
  0x5d   : > { %p1175_p3 = pnand %p1173_p7, %p1777_p9  ;;  %p1179_p8 = scmp.lt.u32.totalorder %s1177_s12, %s1172_s21 }
  0x5e   : > { %p1181_p1 = scmp.lt.u32.totalorder %s1172_s21, %s1523_s30 }
  0x5f   : > { %p1176_p4 = pneg %p1175_p3  ;;  %p1180_p12 = por %p1179_p8, %p1178_p6 }
  0x61   : > { %p1182_p0 = por %p1181_p1, %p1180_p12 }
  0x63   : > { %p1183_p2 = pnand %p1182_p0, %p1176_p4 }
  0x65   : > { %1186 = shalt.err (!%p1183_p2)
}
  0x66   : > { %s1187_s10 = scalar_lea.vmem %s1528_s29, 64  ;;  %s1328_s11 = smov [#allocation2]  }
  0x67   : > { %p1188_p11 = scmp.ne.s32.totalorder %s1528_s29, %s1187_s10  ;;  %s1192_s23 = sshll.u32 %s1328_s11, 4  ;;  %s1193_s23 = int_to_ptr.vmem [resolvable:$false] %s1192_s23 }
  0x68   : > { %s1194_s16 = scalar_lea.vmem %s1193_s23, 128  ;;  %p1195_p13 = scmp.lt.s32.totalorder %s1528_s29, %s1193_s23 }
  0x69   : > { %p1190_p5 = pnand %p1188_p11, %p1777_p9  ;;  %p1196_p7 = scmp.lt.s32.totalorder %s1194_s16, %s1187_s10 }
  0x6b   : > { %p1191_p10 = pneg %p1190_p5  ;;  %p1197_p3 = por %p1196_p7, %p1195_p13 }
  0x6d   : > { %p1198_p6 = pnand %p1197_p3, %p1191_p10 }
  0x6f   : > { %1201 = shalt.err (!%p1198_p6)
}
  0x70   : > { %p1778_p4 = scmp.ne.s32.totalorder %s1764_s13, 0  ;;  %s1779_s27 = sshll.u32 %s1318_s28, 9 }
  0x71   : > { %s1581_s15 = scalar_lea.hbm %s1732_s2, %s1779_s27  ;;  %s1207_s10 = scalar_lea.hbm %s1732_s2, 1024 }
  0x72   : > { %1037 = dma.hbm_to_vmem [thread:$0]  (!%p1778_p4), %s1523_s30, 64, %s1528_s29, %s274_s20  }
  0x73   : > { %s1202_s1 = scalar_lea.hbm %s1581_s15, 512  ;;  %p1208_p0 = scmp.lt.u32.totalorder %s1581_s15, %s1732_s2 }
  0x74   : > { %p1203_p8 = scmp.ne.s32.totalorder %s1581_s15, %s1202_s1  ;;  %p1209_p2 = scmp.lt.u32.totalorder %s1207_s10, %s1202_s1 }
  0x75   : > { %p1211_p5 = scmp.lt.u32.totalorder %s1202_s1, %s1581_s15 }
  0x76   : > { %p1205_p12 = pnand %p1203_p8, %p1777_p9  ;;  %p1210_p11 = por %p1209_p2, %p1208_p0 }
  0x78   : > { %p1206_p1 = pneg %p1205_p12  ;;  %p1212_p10 = por %p1211_p5, %p1210_p11 }
  0x7a   : > { %p1213_p13 = pnand %p1212_p10, %p1206_p1 }
  0x7c   : > { %1216 = shalt.err (!%p1213_p13)
}
  0x7d   : > { %s1217_s20 = scalar_lea.vmem %s1475_s17, 512  ;;  %s1329_s11 = smov [#allocation7]  }
  0x7e   : > { %p1218_p7 = scmp.ne.s32.totalorder %s1475_s17, %s1217_s20  ;;  %s1222_s23 = sshll.u32 %s1329_s11, 4  ;;  %s1223_s23 = int_to_ptr.vmem [resolvable:$false] %s1222_s23 }
  0x7f   : > { %s1224_s16 = scalar_lea.vmem %s1223_s23, 1024  ;;  %p1225_p8 = scmp.lt.s32.totalorder %s1475_s17, %s1223_s23 }
  0x80   : > { %p1220_p3 = pnand %p1218_p7, %p1777_p9  ;;  %p1226_p12 = scmp.lt.s32.totalorder %s1224_s16, %s1217_s20 }
  0x82   : > { %p1221_p6 = pneg %p1220_p3  ;;  %p1227_p0 = por %p1226_p12, %p1225_p8 }
  0x84   : > { %p1228_p2 = pnand %p1227_p0, %p1221_p6 }
  0x86   : > { %1231 = shalt.err (!%p1228_p2)
}
  0x87   : > { %1043 = dma.hbm_to_vmem [thread:$0]  (!%p1778_p4), %s1581_s15, 512, %s1475_s17, %s1443_s22, %s1326_s24, %s1326_s24, %s1327_s7  }
  0x88   : > { %p1780_p9 = scmp.ne.s32.totalorder %s1774_s9, 0 }
  0x89   : > { %s1611_s8 = sand.u32 (!%p1780_p9), 1, %s1306_s25   ;;  %p1781_p1 = scmp.ne.s32.totalorder (!%p1780_p9), %s1768_s18, 0 }
  0x8a   : > { %335 = sbr.rel (%p1780_p9) target bundleno = 627 (0x273), region = 48  ;;  %s952_s27 = sshll.u32 (!%p1780_p9), %s1611_s8, 2 }
  0x8b   : > { %s338_s14 = scalar_lea.sflag (!%p1780_p9), [#allocation3], %s1611_s8  ;;  %s1615_s21 = scalar_lea.vmem (!%p1780_p9), [#allocation2], %s952_s27 }
  0x91   : > { %1285 = dma.done.wait (%p1781_p1), %s338_s14, 64  }
  0x92   : > { %1287 = vsyncadd (%p1781_p1), %s338_s14, 4294967232  ;;  %s346_s13 = sand.u32 1, %s1478_s19   ;;  %s1622_s17 = scalar_lea.vmem [#allocation5], %s952_s27 }
  0x93   : > { %s347_s22 = scalar_lea.sflag [#allocation6], %s346_s13 }
  0x94   : > { %1289 = dma.done.wait (%p1781_p1), %s347_s22, 576  }
  0x95   : > { %1291 = vsyncadd (%p1781_p1), %s347_s22, 4294966720  ;;  %s954_s9 = sshll.u32 %s1611_s8, 5  ;;  %p1782_p4 = scmp.eq.s32.totalorder %s1478_s19, 0 }
  0x96   : > { %s359_s24 = scalar_lea.vmem [#allocation7], %s954_s9 }
  0x97   : > { %1293 = dma.done.wait (%p1782_p4), [#allocation9], 256   ;;  %p1783_p11 = pmov %p1782_p4 }
  0x98   : > { %v1106_v0 = vld [vmem:[#allocation8] sm:$0xff]   ;;  %v1107_v1 = vld [vmem:[#allocation8 + $0x8] sm:$0xff]   ;;  %vm458_vm0 = vcmask 261120   ;;  %v1110_v4 = vld [vmem:[%s359_s24 + $0x10] sm:$0xff]   ;;  %v1330_v8 = vmov 1966171168   ;;  %v545_v10 = vlaneseq }
  0x99   : > { %1295 = vsyncadd (%p1783_p11), [#allocation9], 4294967040  ;;  %994 = vmatprep.subr.bf16.mxu0 %v1106_v0  ;;  %v1108_v2 = vld [vmem:[%s359_s24] sm:$0xff]   ;;  %v1109_v3 = vld [vmem:[%s359_s24 + $0x8] sm:$0xff]   ;;  %v543_v9 = vunpack.c.l.s4 %v1330_v8  ;;  %s956_s29 = sshll.u32 %s1611_s8, 6  ;;  %s1784_s20 = sld [smem:[#allocation17_spill]] }
  0x9a   : > { %995 = vmatpush3.bf16.msra.mxu0 %v1106_v0  ;;  %998 = vmatprep.mubr.msk.bf16.mxu0 %vm458_vm0, %v1108_v2  ;;  %v1111_v5 = vld [vmem:[%s359_s24 + $0x18] sm:$0xff]   ;;  %v1112_v6 = vld [vmem:[%s1735_s5] sm:$0xff]   ;;  %v1113_v7 = vld [vmem:[%s1735_s5 + $0x8] sm:$0xff]   ;;  %v546_v12 = vshrl.u32 %v545_v10, 7  ;;  %s1656_s30 = scalar_lea.vmem [#allocation10], %s956_s29  ;;  %s1785_s16 = sld [smem:[#allocation21_spill]] }
  0x9b   : > { %996 = vmatprep.subr.bf16.mxu0 %v1107_v1  ;;  %1006 = vmatprep.subr.bf16.mxu1 %v1112_v6  ;;  %v544_v11 = vunpack.c.0.s8 %v543_v9  ;;  %v536_v13 = vld [vmem:[%s1615_s21] sm:$0xf]  ;;  %v538_v24 = vld [vmem:[%s1622_s17] sm:$0xf]  ;;  %v957_v32 = vld [vmem:[%s1734_s4] ss:$0 sm:$0xff] }
  0x9c   : > { %1007 = vmatpush3.bf16.msra.mxu1 %v1112_v6  ;;  %v537_v14 = vunpack.c.l.bf16 %v536_v13  ;;  %v592_v23 = vsub.s32 0, %v546_v12  ;;  %v539_v27 = vunpack.c.l.bf16 %v538_v24  ;;  %v968_v13 = vld [vmem:[%s1736_s6] ss:$0 sm:$0xff]  ;;  %s798_s11 = sshll.u32 %s1656_s30, 4  ;;  %s1786_s21 = sld [smem:[#allocation24_spill]]  ;;  %s1668_s11 = int_to_ptr.vmem [resolvable:$true] %s798_s11 }
  0x9d   : > { %1008 = vmatprep.subr.bf16.mxu1 %v1113_v7  ;;  %v547_v15 = vsub.s32 %v544_v11, %v546_v12  ;;  %s783_s22 = scalar_lea.sflag [#allocation4], %s1611_s8  ;;  %s1232_s17 = scalar_lea.vmem %s1668_s11, 1024 }
  0x9e   : > { %997 = vmatpush3.bf16.msra.mxu0 %v1107_v1  ;;  %v541_v18 = vcombine.high %v537_v14, %v537_v14  ;;  %p1233_p5 = scmp.ne.s32.totalorder %s1668_s11, %s1232_s17  ;;  %s1331_s9 = smov [#allocation10]  }
  0x9f   : > { %v548_v16 = vrot.slane %v537_v14, %v547_v15  ;;  %s981_s23 = sshll.u32 %s1784_s20, 10  ;;  %s1236_s24 = sshll.u32 %s1331_s9, 4  ;;  %s1237_s24 = int_to_ptr.vmem [resolvable:$false] %s1236_s24 }
  0xa0   : > { %1009 = vmatpush3.bf16.msra.mxu1 %v1113_v7  ;;  %v555_v21 = vrot.slane %v541_v18, %v547_v15  ;;  %p1787_p10 = scmp.ne.s32.totalorder %s1785_s16, 0  ;;  %s1238_s19 = scalar_lea.vmem %s1237_s24, 2048 }
  0xa1   : > { %999 = vmatmul.mubr.msk.bf16.vlgmr.msra.gmra.mrb[0].mxu0 %vm458_vm0, %v1109_v3  ;;  %v556_v17 = vcombine.high %v548_v16, %v548_v16  ;;  %v564_v19 = vrot.slane %v548_v16, %v547_v15  ;;  %p1239_p3 = scmp.lt.s32.totalorder %s1668_s11, %s1237_s24  ;;  %p1240_p6 = scmp.lt.s32.totalorder %s1238_s19, %s1232_s17 }
  0xa2   : > { %1002 = vmatprep.mubr.msk.bf16.mxu0 %vm458_vm0, %v1110_v4  ;;  %v557_v26 = vcombine.high %v555_v21, %v555_v21  ;;  %v571_v30 = vrot.slane %v555_v21, %v547_v15  ;;  %s1675_s13 = scalar_lea.hbm %s1786_s21, %s981_s23  ;;  %p1234_p13 = pnand %p1233_p5, %p1787_p10 }
  0xa3   : > { %v578_v20 = vrot.slane %v556_v17, %v547_v15  ;;  %v586_v22 = vcombine.high %v564_v19, %v564_v19  ;;  %v593_v33 = vrot.slane %v564_v19, %v592_v23  ;;  %p1241_p8 = por %p1240_p6, %p1239_p3 }
  0xa4   : > { %v585_v31 = vrot.slane %v557_v26, %v547_v15  ;;  %v587_v40 = vcombine.high %v571_v30, %v571_v30  ;;  %v609_v55 = vrot.slane %v571_v30, %v592_v23  ;;  %p1235_p7 = pneg %p1234_p13 }
  0xa5   : > { %v588_v25 = vcombine.high %v578_v20, %v578_v20  ;;  %v601_v28 = vrot.slane %v586_v22, %v592_v23  ;;  %v597_v34 = vrot.slane %v578_v20, %v592_v23  ;;  %v630_v43 = vmul.f32 %v593_v33, %v539_v27 }
  0xa6   : > { %v589_v41 = vcombine.high %v585_v31, %v585_v31  ;;  %v617_v51 = vrot.slane %v587_v40, %v592_v23  ;;  %v613_v56 = vrot.slane %v585_v31, %v592_v23  ;;  %v634_v1 = vmul.f32 %v609_v55, %v539_v27  ;;  %p1242_p12 = pnand %p1241_p8, %p1235_p7 }
  0xa7   : > { %v605_v29 = vrot.slane %v588_v25, %v592_v23  ;;  %v632_v36 = vmul.f32 %v601_v28, %v539_v27  ;;  %v631_v45 = vmul.f32 %v597_v34, %v539_v27 }
  0xa8   : > { %v621_v52 = vrot.slane %v589_v41, %v592_v23  ;;  %v636_v61 = vmul.f32 %v617_v51, %v539_v27  ;;  %v635_v3 = vmul.f32 %v613_v56, %v539_v27 }
  0xa9   : > { %1003 = vmatmul.mubr.msk.bf16.gmra.mrb[4].mxu0 %vm458_vm0, %v1111_v5  ;;  %v633_v39 = vmul.f32 %v605_v29, %v539_v27 }
  0xaa   : > { %v637_v63 = vmul.f32 %v621_v52, %v539_v27 }
 0x174   : > { %v1000_v35 = vpop.f32.mrb[0].mxu0 }
 0x175   : > { %v514_v37 = vadd.f32 %v1000_v35, %v957_v32  ;;  %v505_v38 = vpop.f32.mrb[1].mxu0 }
 0x176   : > { %v506_v42 = vadd.f32 %v957_v32, %v505_v38  ;;  %v1001_v44 = vpop.f32.mrb[2].mxu0 }
 0x177   : > { %v517_v46 = vadd.f32 %v1001_v44, %v957_v32  ;;  %v508_v47 = vpop.f32.mrb[3].mxu0  ;;  %v640_v49 = vmul.f32 %v632_v36, %v514_v37 }
 0x178   : > { %v509_v48 = vadd.f32 %v957_v32, %v508_v47  ;;  %v638_v53 = vmul.f32 %v630_v43, %v506_v42 }
 0x179   : > { %v641_v50 = vmul.f32 %v633_v39, %v517_v46 }
 0x17a   : > { %v639_v54 = vmul.f32 %v631_v45, %v509_v48 }
 0x17b   : > { %v647_v57 = vpack.c.bf16 %v641_v50, %v640_v49 }
 0x17c   : > { %v1004_v58 = vpop.f32.mrb[4].mxu0  ;;  %v646_v59 = vpack.c.bf16 %v639_v54, %v638_v53 }
 0x17d   : > { %v530_v60 = vadd.f32 %v1004_v58, %v957_v32  ;;  %v521_v62 = vpop.f32.mrb[5].mxu0 }
 0x17e   : > { %v522_v0 = vadd.f32 %v957_v32, %v521_v62  ;;  %v1005_v2 = vpop.f32.mrb[6].mxu0  ;;  %1010 = vmatprep.mubr.msk.bf16.mxu1 %vm458_vm0, %v646_v59 }
 0x17f   : > { %v533_v4 = vadd.f32 %v1005_v2, %v957_v32  ;;  %v524_v5 = vpop.f32.mrb[7].mxu0  ;;  %1011 = vmatmul.mubr.msk.bf16.vlgmr.msra.gmra.mrb[0].mxu1 %vm458_vm0, %v647_v57  ;;  %v644_v7 = vmul.f32 %v636_v61, %v530_v60 }
 0x180   : > { %v525_v6 = vadd.f32 %v957_v32, %v524_v5  ;;  %v642_v9 = vmul.f32 %v634_v1, %v522_v0 }
 0x181   : > { %v645_v8 = vmul.f32 %v637_v63, %v533_v4 }
 0x182   : > { %v643_v10 = vmul.f32 %v635_v3, %v525_v6 }
 0x183   : > { %v649_v11 = vpack.c.bf16 %v645_v8, %v644_v7 }
 0x184   : > { %v648_v12 = vpack.c.bf16 %v643_v10, %v642_v9 }
 0x186   : > { %1014 = vmatprep.mubr.msk.bf16.mxu1 %vm458_vm0, %v648_v12 }
 0x187   : > { %1015 = vmatmul.mubr.msk.bf16.gmra.mrb[4].mxu1 %vm458_vm0, %v649_v11 }
 0x252   : > { %v1012_v14 = vpop.f32.mrb[0].mxu1 }
 0x253   : > { %v728_v15 = vadd.f32 %v1012_v14, %v968_v13  ;;  %v719_v16 = vpop.f32.mrb[1].mxu1 }
 0x254   : > { %v720_v17 = vadd.f32 %v968_v13, %v719_v16  ;;  %v1013_v18 = vpop.f32.mrb[2].mxu1 }
 0x255   : > { %v752_v19 = vand.u32 2147483647, %v728_v15  ;;  %v731_v20 = vadd.f32 %v1013_v18, %v968_v13  ;;  %v722_v21 = vpop.f32.mrb[3].mxu1 }
 0x256   : > { %v750_v22 = vand.u32 2147483647, %v720_v17  ;;  %v723_v23 = vadd.f32 %v968_v13, %v722_v21 }
 0x257   : > { %vm760_vm1 = vcmp.eq.f32.partialorder %v752_v19, inf  ;;  %v753_v24 = vand.u32 2147483647, %v731_v20 }
 0x258   : > { %v768_v25 = vsel %vm760_vm1, 0.0, %v728_v15  ;;  %vm758_vm2 = vcmp.eq.f32.partialorder %v750_v22, inf  ;;  %v751_v26 = vand.u32 2147483647, %v723_v23 }
 0x259   : > { %776 = vst.msk [vmem:[%s1656_s30 + $0x10] sm:$0xff] %vm458_vm0, %v768_v25  ;;  %v766_v27 = vsel %vm758_vm2, 0.0, %v720_v17  ;;  %vm761_vm3 = vcmp.eq.f32.partialorder %v753_v24, inf }
 0x25a   : > { %774 = vst.msk [vmem:[%s1656_s30] sm:$0xff] %vm458_vm0, %v766_v27  ;;  %v769_v28 = vsel %vm761_vm3, 0.0, %v731_v20  ;;  %vm759_vm4 = vcmp.eq.f32.partialorder %v751_v26, inf  ;;  %v1016_v29 = vpop.f32.mrb[4].mxu1 }
 0x25b   : > { %777 = vst.msk [vmem:[%s1656_s30 + $0x18] sm:$0xff] %vm458_vm0, %v769_v28  ;;  %v767_v30 = vsel %vm759_vm4, 0.0, %v723_v23  ;;  %v744_v31 = vadd.f32 %v1016_v29, %v968_v13  ;;  %v735_v32 = vpop.f32.mrb[5].mxu1 }
 0x25c   : > { %775 = vst.msk [vmem:[%s1656_s30 + $0x8] sm:$0xff] %vm458_vm0, %v767_v30  ;;  %v736_v33 = vadd.f32 %v968_v13, %v735_v32  ;;  %v1017_v34 = vpop.f32.mrb[6].mxu1 }
 0x25d   : > { %v756_v35 = vand.u32 2147483647, %v744_v31  ;;  %v747_v36 = vadd.f32 %v1017_v34, %v968_v13  ;;  %v738_v37 = vpop.f32.mrb[7].mxu1 }
 0x25e   : > { %v754_v38 = vand.u32 2147483647, %v736_v33  ;;  %v739_v39 = vadd.f32 %v968_v13, %v738_v37 }
 0x25f   : > { %vm764_vm5 = vcmp.eq.f32.partialorder %v756_v35, inf  ;;  %v757_v40 = vand.u32 2147483647, %v747_v36 }
 0x260   : > { %v772_v41 = vsel %vm764_vm5, 0.0, %v744_v31  ;;  %vm762_vm6 = vcmp.eq.f32.partialorder %v754_v38, inf  ;;  %v755_v42 = vand.u32 2147483647, %v739_v39 }
 0x261   : > { %780 = vst.msk [vmem:[%s1656_s30 + $0x30] sm:$0xff] %vm458_vm0, %v772_v41  ;;  %v770_v43 = vsel %vm762_vm6, 0.0, %v736_v33  ;;  %vm765_vm7 = vcmp.eq.f32.partialorder %v757_v40, inf }
 0x262   : > { %778 = vst.msk [vmem:[%s1656_s30 + $0x20] sm:$0xff] %vm458_vm0, %v770_v43  ;;  %v773_v44 = vsel %vm765_vm7, 0.0, %v747_v36  ;;  %vm763_vm8 = vcmp.eq.f32.partialorder %v755_v42, inf }
 0x263   : > { %781 = vst.msk [vmem:[%s1656_s30 + $0x38] sm:$0xff] %vm458_vm0, %v773_v44  ;;  %v771_v45 = vsel %vm763_vm8, 0.0, %v739_v39 }
 0x264   : > { %779 = vst.msk [vmem:[%s1656_s30 + $0x28] sm:$0xff] %vm458_vm0, %v771_v45 }
 0x265   : > { %1245 = shalt.err (!%p1242_p12)
}
 0x266   : > { %s1246_s18 = scalar_lea.hbm %s1675_s13, 1024  ;;  %s1250_s1 = scalar_lea.hbm %s1786_s21, 2048 }
 0x267   : > { %p1247_p0 = scmp.ne.s32.totalorder %s1675_s13, %s1246_s18  ;;  %p1251_p1 = scmp.lt.u32.totalorder %s1675_s13, %s1786_s21 }
 0x268   : > { %p1252_p4 = scmp.lt.u32.totalorder %s1250_s1, %s1246_s18  ;;  %p1254_p5 = scmp.lt.u32.totalorder %s1246_s18, %s1675_s13 }
 0x269   : > { %p1248_p2 = pnand %p1247_p0, %p1787_p10 }
 0x26a   : > { %p1253_p11 = por %p1252_p4, %p1251_p1 }
 0x26b   : > { %p1249_p9 = pneg %p1248_p2 }
 0x26c   : > { %p1255_p13 = por %p1254_p5, %p1253_p11 }
 0x26e   : > { %p1256_p7 = pnand %p1255_p13, %p1249_p9 }
 0x270   : > { %1259 = shalt.err (!%p1256_p7)
}
 0x271   : > { %s1332_s10 = smov 128   ;;  %s1333_s29 = smov 8  }
 0x272   : > { %1028 = dma.vmem_to_hbm [thread:$0]  (%p1787_p10), %s1668_s11, 1024, %s1675_s13, %s783_s22, %s1332_s10, %s1332_s10, %s1333_s29  }
 0x273 PF: > { %s1788_s30 = sld [smem:[#allocation15_spill]]  ;;  %s1789_s20 = sld [smem:[#allocation22_spill]] }
 0x274   : > { %s1790_s23 = sld [smem:[#allocation18_spill]] }
 0x279   : > { %s813_s27 = sand.u32 1, %s1788_s30   ;;  %p1791_p3 = scmp.ne.s32.totalorder %s1789_s20, 0 }
 0x27a   : > { %p1792_p6 = scmp.ge.s32.totalorder %s1790_s23, 2  ;;  %s814_s14 = scalar_lea.sflag [#allocation4], %s813_s27 }
 0x27c   : > { %p1045_p8 = pnand %p1792_p6, %p1791_p3 }
 0x27e   : > { %1297 = dma.done.wait (!%p1045_p8), %s814_s14, 1024  }
 0x27f   : > { %1299 = vsyncadd (!%p1045_p8), %s814_s14, 4294966272  ;;  %s27_s29 = sadd.s32 1, %s1790_s23   ;;  %s1793_s17 = sld [smem:[#allocation16_spill]] }
 0x280   : > { %p24_p12 = scmp.ge.s32.totalorder %s27_s29, 4   ;;  %s1794_s26 = sld [smem:[#allocation20_spill]] }
 0x281   : > { %s1795_s8 = sld [smem:[#allocation19_spill]]  ;;  %s1796_s24 = smov %s1306_s25 }
 0x282   : > { %s1798_s27 = smov %s1318_s28  ;;  %26 = sbr.rel (!%p24_p12) target bundleno = 12 (0xc), region = 121 }
 0x285   : > { %s1797_s25 = smov %s1793_s17 }
 0x287   : > { %s1799_s28 = smov %s1795_s8 }
 0x289   :  { %819 = vsyncpa [#allocation3], 1 }
 0x28a   :  { %821 = vsyncpa [#allocation3 + $0x1], 1 }
 0x28b   :  { %822 = vsyncpa [#allocation6], 1 }
 0x28c   :  { %824 = vsyncpa [#allocation6 + $0x1], 1 }
 0x28d   :  { %825 = vsyncpa [#allocation9], 1 }
 0x28e   :  { %826 = vsyncpa [#allocation4], 1 }
 0x28f   :  { %828 = vsyncpa [#allocation4 + $0x1], 1 }

</bundles_post_ra>
